<compile_context>
chip_gen: v7x
topology: tpu7x:2x2x1
jax: 0.10.0
libtpu: 0.0.40
codegen_flags: <defaults>
</compile_context>

<pallas_src>
import functools
import math

import jax
import jax.numpy as jnp
from jax.experimental import pallas as pl
from jax.experimental.pallas import tpu as pltpu


# --------------------------------------------------------------------------- #
# helpers
# --------------------------------------------------------------------------- #
_SINGLE_BUFFER_BYTES = 2 << 20   # residents >= 2 MiB are single-buffered


def _round_up(x, m):
    return (x + m - 1) // m * m


def _pad_rows(x, padded_rows):
    rows = x.shape[0]
    if rows == padded_rows:
        return x
    return jnp.pad(x, ((0, padded_rows - rows), (0, 0)))


def _vmem_capacity_bytes():
    try:
        return int(pltpu.get_tpu_info().vmem_capacity_bytes)
    except Exception:
        return 64 << 20          # conservative default (v7x per-TensorCore VMEM)


def _vmem_limit(need_bytes, cap):
    return int(min(max(int(need_bytes) + (4 << 20), 16 << 20), cap))


def _pick_head_group(num_heads, head_dim):
    """Smallest G dividing num_heads with a lane-dense (G*D % 128 == 0) block.
    Fallback G = num_heads -> block width == H (full last dim, also legal)."""
    for g in range(1, num_heads + 1):
        if num_heads % g == 0 and (g * head_dim) % 128 == 0:
            return g
    return num_heads


def _resident_bufs(nbytes):
    return 1 if nbytes >= _SINGLE_BUFFER_BYTES else 2


def _resident_spec(shape, nbytes):
    """Constant-index resident operand; single-buffer large weights (no re-DMA
    ever happens, so double-buffering them only wastes VMEM, esp. on v7x)."""
    index_map = lambda *_args: (0,) * len(shape)
    if _resident_bufs(nbytes) == 1:
        return pl.BlockSpec(shape, index_map, pipeline_mode=pl.Buffered(1))
    return pl.BlockSpec(shape, index_map)


# --------------------------------------------------------------------------- #
# kernel 1: QKV projection  (rows tiled, weights resident, f32 accumulate)
# --------------------------------------------------------------------------- #
def _qkv_proj_kernel(x_ref, wq_ref, wk_ref, wv_ref, b_ref, q_ref, k_ref, v_ref):
    x = x_ref[...]                              # (tm, H) native dtype -> MXU
    b = b_ref[...]                              # (3, H) f32: [bq; bk; bv]
    q = jnp.dot(x, wq_ref[...], preferred_element_type=jnp.float32) + b[0:1, :]
    k = jnp.dot(x, wk_ref[...], preferred_element_type=jnp.float32) + b[1:2, :]
    v = jnp.dot(x, wv_ref[...], preferred_element_type=jnp.float32) + b[2:3, :]
    q_ref[...] = q.astype(q_ref.dtype)
    k_ref[...] = k.astype(k_ref.dtype)
    v_ref[...] = v.astype(v_ref.dtype)


# --------------------------------------------------------------------------- #
# kernel 2: attention, one (batch, head-group) per grid step
#   q/k/v/ctx blocks are (S, G*D) column blocks of the flat (Mp, H) arrays.
# --------------------------------------------------------------------------- #
def _attention_kernel(q_ref, k_ref, v_ref, mb_ref, o_ref, *,
                      heads_per_block, head_dim, scale):
    G, D = heads_per_block, head_dim
    mask_bias = mb_ref[...]                     # (1, S) f32, broadcast over rows
    q_all = q_ref[...]                          # (S, G*D)
    k_all = k_ref[...]
    v_all = v_ref[...]

    ctx_parts = []
    for g in range(G):                          # static, small (G = 128 // D)
        cols = slice(g * D, (g + 1) * D)
        q = q_all[:, cols]
        k = k_all[:, cols]
        v = v_all[:, cols]

        # scores = q @ k^T / sqrt(D)  (contract head dims, no explicit transpose)
        s = jax.lax.dot_general(q, k, (((1,), (1,)), ((), ())),
                                preferred_element_type=jnp.float32) * scale
        s = s + mask_bias                       # additive key mask (PyTorch semantics)

        m = jnp.max(s, axis=-1, keepdims=True)
        p = jnp.exp(s - m)
        denom = jnp.sum(p, axis=-1, keepdims=True)

        # PV matmul on unnormalized p; scale the (S, D) ctx by the EUP reciprocal
        # instead of dividing the whole (S, S) probability matrix on the VPU.
        ctx = jnp.dot(p.astype(v.dtype), v, preferred_element_type=jnp.float32)
        ctx_parts.append(ctx * pl.reciprocal(denom, approx=True))

    out = ctx_parts[0] if G == 1 else jnp.concatenate(ctx_parts, axis=-1)
    o_ref[...] = out.astype(o_ref.dtype)        # lane-dense (S, G*D) store


# --------------------------------------------------------------------------- #
# kernel 3: BertSelfOutput (dense + residual + LayerNorm, rows tiled)
# --------------------------------------------------------------------------- #
def _self_output_kernel(x_ref, res_ref, wt_ref, p_ref, o_ref, *, eps):
    y = jnp.dot(x_ref[...], wt_ref[...], preferred_element_type=jnp.float32)
    params = p_ref[...]                         # (3, H) f32: [bias; gamma; beta]
    y = y + params[0:1, :]
    # dropout: identity in eval mode.
    y = y + res_ref[...].astype(jnp.float32)

    mean = jnp.mean(y, axis=-1, keepdims=True)
    c = y - mean
    var = jnp.mean(c * c, axis=-1, keepdims=True)
    out = c * jax.lax.rsqrt(var + eps) * params[1:2, :] + params[2:3, :]
    o_ref[...] = out.astype(o_ref.dtype)


# --------------------------------------------------------------------------- #
# wrapper: full BertAttention forward (eval mode)
# --------------------------------------------------------------------------- #
def bert_attention(hidden_states, wq, bq, wk, bk, wv, bv, wo, bo, gamma, beta,
                   *, num_heads, attention_mask=None, eps=1e-12):
    """hidden_states: [B, S, H]; weights in PyTorch nn.Linear layout [out, in].
    S must be a multiple of 8 (sublane tiling of the per-batch row blocks)."""
    B, S, H = hidden_states.shape
    NH = num_heads
    D = H // NH
    dtype = hidden_states.dtype
    itemsize = jnp.dtype(dtype).itemsize
    M = B * S

    capacity = _vmem_capacity_bytes()
    vmem_cap = max(16 << 20, int(0.7 * capacity))

    # ---- row tile: generation-aware target, shrunk until tiles provably fit ----
    min_rows = 16 if dtype == jnp.bfloat16 else 8
    if capacity >= (96 << 20):                 # v5e / v6e: 128 MiB VMEM
        target = 1024 if dtype == jnp.bfloat16 else 512
    else:                                      # v7x: 64 MiB per TensorCore
        target = 512 if dtype == jnp.bfloat16 else 256
    tm = _round_up(min(target, _round_up(M, min_rows)), min_rows)

    w_sq_bytes = H * H * itemsize              # one (H, H) resident weight
    res_qkv = 3 * _resident_bufs(w_sq_bytes) * w_sq_bytes
    res_out = _resident_bufs(w_sq_bytes) * w_sq_bytes
    while tm > min_rows:
        need_qkv = res_qkv + 2 * 4 * tm * H * itemsize   # x in + q,k,v out (2-deep)
        need_out = res_out + 2 * 3 * tm * H * itemsize   # ctx, residual, out
        if max(need_qkv, need_out) + (2 << 20) <= vmem_cap:
            break
        tm = max(min_rows, _round_up(tm // 2, min_rows))
    Mp = _round_up(M, tm)

    # ---------------- kernel 1: QKV projection ----------------
    x2 = hidden_states.reshape(M, H)
    x2p = _pad_rows(x2, Mp)                    # no-op when tm | M
    # NOTE: with static weights these transposes/stacks are hoisted once by the
    # caller in a real model; done here so the function is self-contained.
    wq_t = wq.T.astype(dtype)
    wk_t = wk.T.astype(dtype)
    wv_t = wv.T.astype(dtype)
    bqkv = jnp.stack([bq, bk, bv]).astype(jnp.float32)            # (3, H)

    qkv_vmem = _vmem_limit(res_qkv + 2 * 4 * tm * H * itemsize + 2 * 3 * H * 4,
                           vmem_cap)
    q2, k2, v2 = pl.pallas_call(
        _qkv_proj_kernel,
        out_shape=tuple(jax.ShapeDtypeStruct((Mp, H), dtype) for _ in range(3)),
        grid_spec=pltpu.PrefetchScalarGridSpec(
            num_scalar_prefetch=0,
            grid=(Mp // tm,),
            in_specs=[
                pl.BlockSpec((tm, H), lambda i: (i, 0)),          # x rows
                _resident_spec((H, H), w_sq_bytes),               # Wq^T (resident)
                _resident_spec((H, H), w_sq_bytes),               # Wk^T
                _resident_spec((H, H), w_sq_bytes),               # Wv^T
                _resident_spec((3, H), 3 * H * 4),                # fused biases
            ],
            out_specs=[pl.BlockSpec((tm, H), lambda i: (i, 0)) for _ in range(3)],
        ),
        compiler_params=pltpu.CompilerParams(
            dimension_semantics=("parallel",),
            vmem_limit_bytes=qkv_vmem),
    )(x2p, wq_t, wk_t, wv_t, bqkv)

    # ---------------- kernel 2: attention ----------------
    G = _pick_head_group(NH, D)                # heads per grid step
    GD = G * D
    HG = NH // G

    if attention_mask is None:
        mask_bias = jnp.zeros((B, 1, S), dtype=jnp.float32)
    else:
        # Same edge case as PyTorch: a fully-masked row gives a degenerate softmax.
        mask_bias = ((1.0 - attention_mask.astype(jnp.float32))
                     * jnp.finfo(jnp.float32).min).reshape(B, 1, S)

    attn_kernel = functools.partial(_attention_kernel, heads_per_block=G,
                                    head_dim=D, scale=1.0 / math.sqrt(D))
    attn_vmem = _vmem_limit(2 * 4 * S * GD * itemsize + 2 * S * 4 + G * S * S * 4,
                            vmem_cap)
    ctx = pl.pallas_call(
        attn_kernel,
        out_shape=jax.ShapeDtypeStruct((Mp, H), dtype),
        grid_spec=pltpu.PrefetchScalarGridSpec(
            num_scalar_prefetch=0,
            grid=(B, HG),
            in_specs=[
                pl.BlockSpec((S, GD), lambda b, hg: (b, hg)),     # q rows/cols
                pl.BlockSpec((S, GD), lambda b, hg: (b, hg)),     # k
                pl.BlockSpec((S, GD), lambda b, hg: (b, hg)),     # v
                pl.BlockSpec((None, 1, S), lambda b, hg: (b, 0, 0)),  # mask (squeezed)
            ],
            out_specs=pl.BlockSpec((S, GD), lambda b, hg: (b, hg)),
        ),
        compiler_params=pltpu.CompilerParams(
            dimension_semantics=("parallel", "parallel"),
            vmem_limit_bytes=attn_vmem),
    )(q2, k2, v2, mask_bias)
    # ctx is already laid out as (Mp, H) == permute(0,2,1,3).view of PyTorch;
    # rows >= M (padding) are never written and are sliced off at the end.

    # ---------------- kernel 3: BertSelfOutput ----------------
    wo_t = wo.T.astype(dtype)                                       # (H, H)
    out_params = jnp.stack([bo, gamma, beta]).astype(jnp.float32)   # (3, H)

    out_kernel = functools.partial(_self_output_kernel, eps=eps)
    out_vmem = _vmem_limit(res_out + 2 * 3 * tm * H * itemsize + 2 * 3 * H * 4,
                           vmem_cap)
    out = pl.pallas_call(
        out_kernel,
        out_shape=jax.ShapeDtypeStruct((Mp, H), dtype),
        grid_spec=pltpu.PrefetchScalarGridSpec(
            num_scalar_prefetch=0,
            grid=(Mp // tm,),
            in_specs=[
                pl.BlockSpec((tm, H), lambda i: (i, 0)),          # context rows
                pl.BlockSpec((tm, H), lambda i: (i, 0)),          # residual rows
                _resident_spec((H, H), w_sq_bytes),               # Wo^T (resident)
                _resident_spec((3, H), 3 * H * 4),                # bias/gamma/beta
            ],
            out_specs=pl.BlockSpec((tm, H), lambda i: (i, 0)),
        ),
        compiler_params=pltpu.CompilerParams(
            dimension_semantics=("parallel",),
            vmem_limit_bytes=out_vmem),
    )(ctx, x2p, wo_t, out_params)

    return out[:M].reshape(B, S, H)


# --------------------------------------------------------------------------- #
# pure-JAX reference (eval mode, matches the PyTorch module)
# --------------------------------------------------------------------------- #
def _reference(x, mask, wq, bq, wk, bk, wv, bv, wo, bo, gamma, beta,
               num_heads, eps=1e-12):
    P = jax.lax.Precision.HIGHEST
    B, S, H = x.shape
    D = H // num_heads

    def lin(z, w, b):
        return jnp.einsum("bsh,oh->bso", z, w, precision=P) + b

    q = lin(x, wq, bq).reshape(B, S, num_heads, D).transpose(0, 2, 1, 3)
    k = lin(x, wk, bk).reshape(B, S, num_heads, D).transpose(0, 2, 1, 3)
    v = lin(x, wv, bv).reshape(B, S, num_heads, D).transpose(0, 2, 1, 3)

    s = jnp.einsum("bhqd,bhkd->bhqk", q, k, precision=P) / math.sqrt(D)
    if mask is not None:
        ext = (1.0 - mask[:, None, None, :]) * jnp.finfo(jnp.float32).min
        s = s + ext
    p = jax.nn.softmax(s, axis=-1)
    ctx = jnp.einsum("bhqk,bhkd->bhqd", p, v, precision=P)
    ctx = ctx.transpose(0, 2, 1, 3).reshape(B, S, H)

    y = jnp.einsum("bsh,oh->bso", ctx, wo, precision=P) + bo
    y = y + x
    mean = jnp.mean(y, axis=-1, keepdims=True)
    var = jnp.mean((y - mean) ** 2, axis=-1, keepdims=True)
    return (y - mean) / jnp.sqrt(var + eps) * gamma + beta


if __name__ == "__main__":
    # Small but BERT-like: D = 64 -> head-group G = 2, lane-dense 128-wide blocks.
    B, S, H, NH = 2, 8, 128, 2
    key = jax.random.PRNGKey(0)
    ks = jax.random.split(key, 12)

    x = jax.random.normal(ks[0], (B, S, H), dtype=jnp.float32)

    def init_linear(kw, kb, out_dim, in_dim):
        w = jax.random.normal(kw, (out_dim, in_dim), jnp.float32) / jnp.sqrt(in_dim)
        b = jax.random.normal(kb, (out_dim,), jnp.float32) * 0.02
        return w, b

    wq, bq = init_linear(ks[1], ks[2], H, H)
    wk, bk = init_linear(ks[3], ks[4], H, H)
    wv, bv = init_linear(ks[5], ks[6], H, H)
    wo, bo = init_linear(ks[7], ks[8], H, H)
    gamma = 1.0 + 0.1 * jax.random.normal(ks[9], (H,), jnp.float32)
    beta = 0.1 * jax.random.normal(ks[10], (H,), jnp.float32)

    # batch 0 fully valid; batch 1 masks the last two key positions
    attention_mask = jnp.array([[1.0] * S, [1.0] * (S - 2) + [0.0] * 2],
                               dtype=jnp.float32)

    out = bert_attention(x, wq, bq, wk, bk, wv, bv, wo, bo, gamma, beta,
                         num_heads=NH, attention_mask=attention_mask)
    out = jax.block_until_ready(out)

    ref = _reference(x, attention_mask, wq, bq, wk, bk, wv, bv, wo, bo,
                     gamma, beta, NH)

    assert out.shape == (B, S, H)
    err = float(jnp.max(jnp.abs(out - ref)))
    # Tolerance loosened vs exact-divide softmax because the kernel uses the EUP
    # approximate reciprocal for the softmax denominator.
    assert jnp.allclose(out, ref, atol=5e-3, rtol=5e-3), \
        f"mismatch vs reference (max abs err {err:.3e})"

    print("KERNEL_OK")
</pallas_src>

<mosaic_0001>
module attributes {stable_mosaic.version = 11 : i64} {
  func.func @_qkv_proj_kernel(%arg0: i32, %arg1: memref<16x128xf32, #tpu.memory_space<vmem>>, %arg2: memref<128x128xf32, #tpu.memory_space<vmem>>, %arg3: memref<128x128xf32, #tpu.memory_space<vmem>>, %arg4: memref<128x128xf32, #tpu.memory_space<vmem>>, %arg5: memref<3x128xf32, #tpu.memory_space<vmem>>, %arg6: memref<16x128xf32, #tpu.memory_space<vmem>>, %arg7: memref<16x128xf32, #tpu.memory_space<vmem>>, %arg8: memref<16x128xf32, #tpu.memory_space<vmem>>) attributes {dimension_semantics = [#tpu.dimension_semantics<parallel>], iteration_bounds = array<i64: 1>, scalar_prefetch = 0 : i64, scratch_operands = 0 : i64, tpu.core_type = #tpu.core_type<tc>, window_params = [{transform_indices = @transform_0, window_bounds = array<i64: 16, 128>}, {pipeline_mode = #tpu.pipeline_mode<synchronous>, transform_indices = @transform_1, window_bounds = array<i64: 128, 128>}, {pipeline_mode = #tpu.pipeline_mode<synchronous>, transform_indices = @transform_2, window_bounds = array<i64: 128, 128>}, {pipeline_mode = #tpu.pipeline_mode<synchronous>, transform_indices = @transform_3, window_bounds = array<i64: 128, 128>}, {pipeline_mode = #tpu.pipeline_mode<synchronous>, transform_indices = @transform_4, window_bounds = array<i64: 3, 128>}, {transform_indices = @transform_5, window_bounds = array<i64: 16, 128>}, {transform_indices = @transform_6, window_bounds = array<i64: 16, 128>}, {transform_indices = @transform_7, window_bounds = array<i64: 16, 128>}]} {
    %c0 = arith.constant 0 : index
    %c0_0 = arith.constant 0 : index
    %0 = vector.load %arg1[%c0, %c0_0] : memref<16x128xf32, #tpu.memory_space<vmem>>, vector<16x128xf32>
    %c0_1 = arith.constant 0 : index
    %c0_2 = arith.constant 0 : index
    %1 = vector.load %arg5[%c0_1, %c0_2] : memref<3x128xf32, #tpu.memory_space<vmem>>, vector<3x128xf32>
    %c0_3 = arith.constant 0 : index
    %c0_4 = arith.constant 0 : index
    %2 = vector.load %arg2[%c0_3, %c0_4] : memref<128x128xf32, #tpu.memory_space<vmem>>, vector<128x128xf32>
    %cst = arith.constant dense<0.000000e+00> : vector<16x128xf32>
    %3 = tpu.matmul %0, %2, %cst {dimension_numbers = #tpu.dot_dimension_numbers<[1], [0], [0], [1], [0, 0, 1, 1], [], []>} : vector<16x128xf32>, vector<128x128xf32>, vector<16x128xf32> -> vector<16x128xf32>
    %4 = vector.extract_strided_slice %1 {offsets = [0, 0], sizes = [1, 128], strides = [1, 1]} : vector<3x128xf32> to vector<1x128xf32>
    %5 = vector.broadcast %4 : vector<1x128xf32> to vector<16x128xf32>
    %6 = arith.addf %3, %5 : vector<16x128xf32>
    %c0_5 = arith.constant 0 : index
    %c0_6 = arith.constant 0 : index
    %7 = vector.load %arg3[%c0_5, %c0_6] : memref<128x128xf32, #tpu.memory_space<vmem>>, vector<128x128xf32>
    %cst_7 = arith.constant dense<0.000000e+00> : vector<16x128xf32>
    %8 = tpu.matmul %0, %7, %cst_7 {dimension_numbers = #tpu.dot_dimension_numbers<[1], [0], [0], [1], [0, 0, 1, 1], [], []>} : vector<16x128xf32>, vector<128x128xf32>, vector<16x128xf32> -> vector<16x128xf32>
    %9 = vector.extract_strided_slice %1 {offsets = [1, 0], sizes = [1, 128], strides = [1, 1]} : vector<3x128xf32> to vector<1x128xf32>
    %10 = vector.broadcast %9 : vector<1x128xf32> to vector<16x128xf32>
    %11 = arith.addf %8, %10 : vector<16x128xf32>
    %c0_8 = arith.constant 0 : index
    %c0_9 = arith.constant 0 : index
    %12 = vector.load %arg4[%c0_8, %c0_9] : memref<128x128xf32, #tpu.memory_space<vmem>>, vector<128x128xf32>
    %cst_10 = arith.constant dense<0.000000e+00> : vector<16x128xf32>
    %13 = tpu.matmul %0, %12, %cst_10 {dimension_numbers = #tpu.dot_dimension_numbers<[1], [0], [0], [1], [0, 0, 1, 1], [], []>} : vector<16x128xf32>, vector<128x128xf32>, vector<16x128xf32> -> vector<16x128xf32>
    %14 = vector.extract_strided_slice %1 {offsets = [2, 0], sizes = [1, 128], strides = [1, 1]} : vector<3x128xf32> to vector<1x128xf32>
    %15 = vector.broadcast %14 : vector<1x128xf32> to vector<16x128xf32>
    %16 = arith.addf %13, %15 : vector<16x128xf32>
    %c0_11 = arith.constant 0 : index
    %c0_12 = arith.constant 0 : index
    %17 = vector.load %arg6[%c0_11, %c0_12] : memref<16x128xf32, #tpu.memory_space<vmem>>, vector<16x128xf32>
    tpu.vector_store %arg6[%c0_11, %c0_12], %6 {strides = array<i32>} : memref<16x128xf32, #tpu.memory_space<vmem>>, vector<16x128xf32>,
    %c0_13 = arith.constant 0 : index
    %c0_14 = arith.constant 0 : index
    %18 = vector.load %arg7[%c0_13, %c0_14] : memref<16x128xf32, #tpu.memory_space<vmem>>, vector<16x128xf32>
    tpu.vector_store %arg7[%c0_13, %c0_14], %11 {strides = array<i32>} : memref<16x128xf32, #tpu.memory_space<vmem>>, vector<16x128xf32>,
    %c0_15 = arith.constant 0 : index
    %c0_16 = arith.constant 0 : index
    %19 = vector.load %arg8[%c0_15, %c0_16] : memref<16x128xf32, #tpu.memory_space<vmem>>, vector<16x128xf32>
    tpu.vector_store %arg8[%c0_15, %c0_16], %16 {strides = array<i32>} : memref<16x128xf32, #tpu.memory_space<vmem>>, vector<16x128xf32>,
    return
  }
  func.func @transform_0(%arg0: i32) -> (i32, i32) {
    %c0_i32 = arith.constant 0 : i32
    %c0_i32_0 = arith.constant 0 : i32
    return %arg0, %c0_i32 : i32, i32
  }
  func.func @transform_1(%arg0: i32) -> (i32, i32) {
    %c0_i32 = arith.constant 0 : i32
    %c0_i32_0 = arith.constant 0 : i32
    %c0_i32_1 = arith.constant 0 : i32
    return %c0_i32, %c0_i32_0 : i32, i32
  }
  func.func @transform_2(%arg0: i32) -> (i32, i32) {
    %c0_i32 = arith.constant 0 : i32
    %c0_i32_0 = arith.constant 0 : i32
    %c0_i32_1 = arith.constant 0 : i32
    return %c0_i32, %c0_i32_0 : i32, i32
  }
  func.func @transform_3(%arg0: i32) -> (i32, i32) {
    %c0_i32 = arith.constant 0 : i32
    %c0_i32_0 = arith.constant 0 : i32
    %c0_i32_1 = arith.constant 0 : i32
    return %c0_i32, %c0_i32_0 : i32, i32
  }
  func.func @transform_4(%arg0: i32) -> (i32, i32) {
    %c0_i32 = arith.constant 0 : i32
    %c0_i32_0 = arith.constant 0 : i32
    %c0_i32_1 = arith.constant 0 : i32
    return %c0_i32, %c0_i32_0 : i32, i32
  }
  func.func @transform_5(%arg0: i32) -> (i32, i32) {
    %c0_i32 = arith.constant 0 : i32
    %c0_i32_0 = arith.constant 0 : i32
    return %arg0, %c0_i32 : i32, i32
  }
  func.func @transform_6(%arg0: i32) -> (i32, i32) {
    %c0_i32 = arith.constant 0 : i32
    %c0_i32_0 = arith.constant 0 : i32
    return %arg0, %c0_i32 : i32, i32
  }
  func.func @transform_7(%arg0: i32) -> (i32, i32) {
    %c0_i32 = arith.constant 0 : i32
    %c0_i32_0 = arith.constant 0 : i32
    return %arg0, %c0_i32 : i32, i32
  }
}

</mosaic_0001>

<bundles_post_ra>
// kernel: tpu_custom_call.1
= control target key start
LH: loop header
LB: loop body
LE: loop exit
PB: predicated region body
PF: predicated region fallthrough
CT: control target
= control target key end

     0   :  { %13 = vsyncpa [#allocation3], 0  ;;  %s1028_s0 = inlined_call_operand.hbm [shape: f32[16,128], index: 0, kind: input, shape index: {}]   ;;  %s1029_s1 = inlined_call_operand.hbm [shape: f32[128,128], index: 1, kind: input, shape index: {}]   ;;  %s1030_s2 = inlined_call_operand.hbm [shape: f32[128,128], index: 2, kind: input, shape index: {}]   ;;  %s1031_s3 = inlined_call_operand.hbm [shape: f32[128,128], index: 3, kind: input, shape index: {}]   ;;  %s1032_s4 = inlined_call_operand.vmem [shape: f32[3,128], index: 4, kind: input, shape index: {}]   ;;  %s1033_s5 = inlined_call_operand.hbm [shape: f32[16,128], index: 5, kind: output, shape index: {0}]   ;;  %s1034_s6 = inlined_call_operand.hbm [shape: f32[16,128], index: 6, kind: output, shape index: {1}]   ;;  %s1035_s7 = inlined_call_operand.hbm [shape: f32[16,128], index: 7, kind: output, shape index: {2}]  }
   0x1   :  { %14 = vsyncpa [#allocation6], 0 }
   0x2   :  { %15 = vsyncpa [#allocation9], 0 }
   0x3   :  { %16 = vsyncpa [#allocation4], 0 }
   0x4   :  { %17 = vsyncpa [#allocation12], 0  ;;  %s852_s24 = smov [#allocation5]   ;;  %s853_s26 = smov [#allocation2]  }
   0x5   :  { %s35_s25 = sshll.u32 %s852_s24, 4  ;;  %s23_s27 = sshll.u32 %s853_s26, 4  ;;  %s36_s25 = int_to_ptr.vmem [resolvable:$true] %s35_s25  ;;  %s901_s27 = int_to_ptr.vmem [resolvable:$true] %s23_s27 }
   0x6   :  { %s688_s30 = scalar_lea.hbm %s1029_s1, 2048 }
   0x7   :  { %p689_p0 = scmp.ne.s32.totalorder %s1029_s1, %s688_s30  ;;  %p692_p1 = scmp.lt.u32.totalorder %s688_s30, %s1029_s1 }
   0x9   :  { %p694_p2 = pnand %p692_p1, %p689_p0 }
   0xb   :  { %697 = shalt.err (!%p694_p2)
}
   0xc   :  { %s698_s12 = scalar_lea.vmem %s36_s25, 2048  ;;  %p703_p4 = scmp.lt.s32.totalorder %s36_s25, %s36_s25 }
   0xd   :  { %p699_p3 = scmp.ne.s32.totalorder %s36_s25, %s698_s12  ;;  %p704_p5 = scmp.lt.s32.totalorder %s698_s12, %s698_s12 }
   0xf   :  { %p705_p6 = por %p704_p5, %p703_p4 }
  0x11   :  { %p706_p7 = pnand %p705_p6, %p699_p3 }
  0x13   :  { %709 = shalt.err (!%p706_p7)
}
  0x14   :  { %s854_s13 = smov 128   ;;  %s855_s14 = smov 8  }
  0x15   :  { %41 = dma.hbm_to_vmem [thread:$0]  %s1029_s1, 2048, %s36_s25, [#allocation6], %s854_s13, %s854_s13, %s855_s14  }
  0x16   :  { %s710_s19 = scalar_lea.hbm %s1028_s0, 256 }
  0x17   :  { %p711_p8 = scmp.ne.s32.totalorder %s1028_s0, %s710_s19  ;;  %p714_p9 = scmp.lt.u32.totalorder %s710_s19, %s1028_s0 }
  0x19   :  { %p716_p10 = pnand %p714_p9, %p711_p8 }
  0x1b   :  { %719 = shalt.err (!%p716_p10)
}
  0x1c   :  { %s720_s24 = scalar_lea.vmem %s901_s27, 256  ;;  %p725_p12 = scmp.lt.s32.totalorder %s901_s27, %s901_s27 }
  0x1d   :  { %p721_p11 = scmp.ne.s32.totalorder %s901_s27, %s720_s24  ;;  %p726_p13 = scmp.lt.s32.totalorder %s720_s24, %s720_s24 }
  0x1f   :  { %p727_p0 = por %p726_p13, %p725_p12 }
  0x21   :  { %p728_p1 = pnand %p727_p0, %p721_p11 }
  0x23   :  { %731 = shalt.err (!%p728_p1)
}
  0x24   :  { %29 = dma.hbm_to_vmem [thread:$0]  %s1028_s0, 256, %s901_s27, [#allocation3], %s854_s13, %s854_s13, %s855_s14  }
  0x25   :  { %s856_s26 = smov [#allocation7]   ;;  %s857_s29 = smov [#allocation8]  }
  0x26   :  { %s47_s28 = sshll.u32 %s856_s26, 4  ;;  %s59_s30 = sshll.u32 %s857_s29, 4  ;;  %s48_s28 = int_to_ptr.vmem [resolvable:$true] %s47_s28  ;;  %s938_s30 = int_to_ptr.vmem [resolvable:$true] %s59_s30 }
  0x27   :  { %s732_s10 = scalar_lea.hbm %s1030_s2, 2048 }
  0x28   :  { %p733_p2 = scmp.ne.s32.totalorder %s1030_s2, %s732_s10  ;;  %p736_p3 = scmp.lt.u32.totalorder %s732_s10, %s1030_s2 }
  0x2a   :  { %p738_p4 = pnand %p736_p3, %p733_p2 }
  0x2c   :  { %741 = shalt.err (!%p738_p4)
}
  0x2d   :  { %s742_s0 = scalar_lea.vmem %s48_s28, 2048  ;;  %p747_p6 = scmp.lt.s32.totalorder %s48_s28, %s48_s28 }
  0x2e   :  { %p743_p5 = scmp.ne.s32.totalorder %s48_s28, %s742_s0  ;;  %p748_p7 = scmp.lt.s32.totalorder %s742_s0, %s742_s0 }
  0x30   :  { %p749_p8 = por %p748_p7, %p747_p6 }
  0x32   :  { %p750_p9 = pnand %p749_p8, %p743_p5 }
  0x34   :  { %753 = shalt.err (!%p750_p9)
}
  0x35   :  { %53 = dma.hbm_to_vmem [thread:$0]  %s1030_s2, 2048, %s48_s28, [#allocation6], %s854_s13, %s854_s13, %s855_s14  }
  0x36   :  { %s754_s20 = scalar_lea.hbm %s1031_s3, 2048 }
  0x37   :  { %p755_p10 = scmp.ne.s32.totalorder %s1031_s3, %s754_s20  ;;  %p758_p11 = scmp.lt.u32.totalorder %s754_s20, %s1031_s3 }
  0x39   :  { %p760_p12 = pnand %p758_p11, %p755_p10 }
  0x3b   :  { %763 = shalt.err (!%p760_p12)
}
  0x3c   :  { %s764_s1 = scalar_lea.vmem %s938_s30, 2048  ;;  %p769_p0 = scmp.lt.s32.totalorder %s938_s30, %s938_s30 }
  0x3d   :  { %p765_p13 = scmp.ne.s32.totalorder %s938_s30, %s764_s1  ;;  %p770_p1 = scmp.lt.s32.totalorder %s764_s1, %s764_s1 }
  0x3f   :  { %p771_p2 = por %p770_p1, %p769_p0 }
  0x41   :  { %p772_p3 = pnand %p771_p2, %p765_p13 }
  0x43   :  { %775 = shalt.err (!%p772_p3)
}
  0x44   :  { %65 = dma.hbm_to_vmem [thread:$0]  %s1031_s3, 2048, %s938_s30, [#allocation9], %s854_s13, %s854_s13, %s855_s14  }
  0x45   :  { %842 = dma.done.wait [#allocation3], 256  }
  0x46   :  { %843 = vsyncadd [#allocation3], 4294967040 }
  0x47   :  { %844 = dma.done.wait [#allocation6], 4096  }
  0x48   :  { %845 = vsyncadd [#allocation6], 4294963200 }
  0x49   :  { %846 = dma.done.wait [#allocation9], 2048  }
  0x4a   :  { %847 = vsyncadd [#allocation9], 4294965248  ;;  %v83_v0 = vld [vmem:[#allocation5] sm:$0xff]  ;;  %v84_v1 = vld [vmem:[#allocation5 + $0x8] sm:$0xff]  ;;  %s858_s28 = smov [#allocation10]   ;;  %s859_s30 = smov [#allocation11]  }
  0x4b   :  { %v85_v2 = vld [vmem:[#allocation5 + $0x10] sm:$0xff]  ;;  %v583_v3 = vpack.c.bf16 %v84_v1, %v83_v0  ;;  %v86_v4 = vld [vmem:[#allocation5 + $0x18] sm:$0xff]  ;;  %v87_v6 = vld [vmem:[#allocation5 + $0x20] sm:$0xff]  ;;  %s379_s29 = sshll.u32 %s858_s28, 4  ;;  %s391_s8 = sshll.u32 %s859_s30, 4  ;;  %s380_s29 = int_to_ptr.vmem [resolvable:$true] %s379_s29  ;;  %s392_s8 = int_to_ptr.vmem [resolvable:$true] %s391_s8 }
  0x4c   :  { %v587_v5 = vpack.c.bf16 %v86_v4, %v85_v2  ;;  %v88_v7 = vld [vmem:[#allocation5 + $0x28] sm:$0xff]  ;;  %v178_v9 = vld [vmem:[#allocation7] sm:$0xff]  ;;  %v89_v11 = vld [vmem:[#allocation5 + $0x30] sm:$0xff]  ;;  %s776_s9 = scalar_lea.vmem %s380_s29, 256  ;;  %p781_p5 = scmp.lt.s32.totalorder %s380_s29, %s380_s29 }
  0x4d   :  { %584 = vmatprep.subr.bf16.mxu0 %v583_v3  ;;  %v591_v8 = vpack.c.bf16 %v88_v7, %v87_v6  ;;  %v179_v10 = vld [vmem:[#allocation7 + $0x8] sm:$0xff]  ;;  %v90_v12 = vld [vmem:[#allocation5 + $0x38] sm:$0xff]  ;;  %v975_v14 = vld [vmem:[#allocation2] sm:$0xff]  ;;  %p777_p4 = scmp.ne.s32.totalorder %s380_s29, %s776_s9  ;;  %p782_p6 = scmp.lt.s32.totalorder %s776_s9, %s776_s9 }
  0x4e   :  { %586 = vmatpush3.bf16.msra.mxu0 %v583_v3  ;;  %v615_v13 = vpack.c.bf16 %v179_v10, %v178_v9  ;;  %510 = vmatprep.mubr.f32.mxu0 %v975_v14  ;;  %v180_v15 = vld [vmem:[#allocation7 + $0x10] sm:$0xff]  ;;  %v181_v16 = vld [vmem:[#allocation7 + $0x18] sm:$0xff]  ;;  %v182_v18 = vld [vmem:[#allocation7 + $0x20] sm:$0xff]  ;;  %v595_v19 = vpack.c.bf16 %v90_v12, %v89_v11  ;;  %v99_v10 = vlaneseq }
  0x4f   :  { %588 = vmatprep.subr.bf16.mxu0 %v587_v5  ;;  %545 = vmatprep.mubr.f32.mxu1 %v975_v14  ;;  %v619_v17 = vpack.c.bf16 %v181_v16, %v180_v15  ;;  %v183_v20 = vld [vmem:[#allocation7 + $0x28] sm:$0xff]  ;;  %v91_v21 = vld [vmem:[#allocation5 + $0x40] sm:$0xff]  ;;  %v184_v24 = vld [vmem:[#allocation7 + $0x30] sm:$0xff]  ;;  %p783_p7 = por %p782_p6, %p781_p5 }
  0x50   :  { %616 = vmatprep.subr.bf16.mxu1 %v615_v13  ;;  %v92_v22 = vld [vmem:[#allocation5 + $0x48] sm:$0xff]  ;;  %v623_v23 = vpack.c.bf16 %v183_v20, %v182_v18  ;;  %v185_v25 = vld [vmem:[#allocation7 + $0x38] sm:$0xff]  ;;  %v93_v27 = vld [vmem:[#allocation5 + $0x50] sm:$0xff]  ;;  %v100_v11 = vshrl.u32 %v99_v10, 7 }
  0x51   :  { %618 = vmatpush3.bf16.msra.mxu1 %v615_v13  ;;  %v599_v26 = vpack.c.bf16 %v92_v22, %v91_v21  ;;  %v94_v28 = vld [vmem:[#allocation5 + $0x58] sm:$0xff]  ;;  %v627_v29 = vpack.c.bf16 %v185_v25, %v184_v24  ;;  %v186_v30 = vld [vmem:[#allocation7 + $0x40] sm:$0xff]  ;;  %v187_v31 = vld [vmem:[#allocation7 + $0x48] sm:$0xff]  ;;  %p784_p8 = pnand %p783_p7, %p777_p4 }
  0x52   :  { %590 = vmatpush3.bf16.msra.mxu0 %v587_v5  ;;  %620 = vmatprep.subr.bf16.mxu1 %v619_v17  ;;  %v603_v32 = vpack.c.bf16 %v94_v28, %v93_v27  ;;  %v95_v33 = vld [vmem:[#allocation5 + $0x60] sm:$0xff]  ;;  %v96_v34 = vld [vmem:[#allocation5 + $0x68] sm:$0xff]  ;;  %v631_v35 = vpack.c.bf16 %v187_v31, %v186_v30  ;;  %v188_v36 = vld [vmem:[#allocation7 + $0x50] sm:$0xff]  ;;  %v101_v12 = vsub.s32 0, %v100_v11  ;;  %v196_v15 = vsub.s32 1, %v100_v11 }
  0x53   :  { %592 = vmatprep.subr.bf16.mxu0 %v591_v8  ;;  %v189_v37 = vld [vmem:[#allocation7 + $0x58] sm:$0xff]  ;;  %v607_v38 = vpack.c.bf16 %v96_v34, %v95_v33  ;;  %v97_v39 = vld [vmem:[#allocation5 + $0x70] sm:$0xff]  ;;  %v190_v42 = vld [vmem:[#allocation7 + $0x60] sm:$0xff] }
  0x54   :  { %v98_v40 = vld [vmem:[#allocation5 + $0x78] sm:$0xff]  ;;  %v635_v41 = vpack.c.bf16 %v189_v37, %v188_v36  ;;  %v191_v43 = vld [vmem:[#allocation7 + $0x68] sm:$0xff]  ;;  %v273_v45 = vld [vmem:[#allocation8] sm:$0xff] }
  0x55   :  { %622 = vmatpush3.bf16.msra.mxu1 %v619_v17  ;;  %v611_v44 = vpack.c.bf16 %v98_v40, %v97_v39  ;;  %v274_v46 = vld [vmem:[#allocation8 + $0x8] sm:$0xff]  ;;  %v639_v47 = vpack.c.bf16 %v191_v43, %v190_v42  ;;  %v192_v48 = vld [vmem:[#allocation7 + $0x70] sm:$0xff]  ;;  %v193_v49 = vld [vmem:[#allocation7 + $0x78] sm:$0xff] }
  0x56   :  { %594 = vmatpush3.bf16.msra.mxu0 %v591_v8  ;;  %624 = vmatprep.subr.bf16.mxu1 %v623_v23  ;;  %v647_v50 = vpack.c.bf16 %v274_v46, %v273_v45  ;;  %v275_v51 = vld [vmem:[#allocation8 + $0x10] sm:$0xff]  ;;  %v276_v52 = vld [vmem:[#allocation8 + $0x18] sm:$0xff]  ;;  %v643_v53 = vpack.c.bf16 %v193_v49, %v192_v48  ;;  %v277_v56 = vld [vmem:[#allocation8 + $0x20] sm:$0xff] }
  0x57   :  { %596 = vmatprep.subr.bf16.mxu0 %v595_v19  ;;  %v81_v54 = vld [vmem:[#allocation2 + $0x8] sm:$0xff]  ;;  %v651_v55 = vpack.c.bf16 %v276_v52, %v275_v51  ;;  %v278_v57 = vld [vmem:[#allocation8 + $0x28] sm:$0xff]  ;;  %v279_v59 = vld [vmem:[#allocation8 + $0x30] sm:$0xff] }
  0x58   :  { %v655_v58 = vpack.c.bf16 %v278_v57, %v277_v56  ;;  %v280_v60 = vld [vmem:[#allocation8 + $0x38] sm:$0xff]  ;;  %v281_v62 = vld [vmem:[#allocation8 + $0x40] sm:$0xff]  ;;  %v282_v63 = vld [vmem:[#allocation8 + $0x48] sm:$0xff] }
  0x59   :  { %626 = vmatpush3.bf16.msra.mxu1 %v623_v23  ;;  %v659_v61 = vpack.c.bf16 %v280_v60, %v279_v59  ;;  %v663_v0 = vpack.c.bf16 %v282_v63, %v281_v62  ;;  %v283_v1 = vld [vmem:[#allocation8 + $0x50] sm:$0xff]  ;;  %v284_v2 = vld [vmem:[#allocation8 + $0x58] sm:$0xff]  ;;  %v285_v4 = vld [vmem:[#allocation8 + $0x60] sm:$0xff] }
  0x5a   :  { %598 = vmatpush3.bf16.msra.mxu0 %v595_v19  ;;  %628 = vmatprep.subr.bf16.mxu1 %v627_v29  ;;  %v667_v3 = vpack.c.bf16 %v284_v2, %v283_v1  ;;  %v286_v5 = vld [vmem:[#allocation8 + $0x68] sm:$0xff]  ;;  %v287_v7 = vld [vmem:[#allocation8 + $0x70] sm:$0xff]  ;;  %v288_v8 = vld [vmem:[#allocation8 + $0x78] sm:$0xff] }
  0x5b   :  { %600 = vmatprep.subr.bf16.mxu0 %v599_v26  ;;  %v671_v6 = vpack.c.bf16 %v286_v5, %v285_v4  ;;  %v675_v9 = vpack.c.bf16 %v288_v8, %v287_v7  ;;  %v82_v13 = vld [vmem:[%s1032_s4] sm:$0x7] }
  0x5c   :  { %v197_v20 = vrot.slane %v82_v13, %v196_v15 }
  0x5d   :  { %630 = vmatpush3.bf16.msra.mxu1 %v627_v29 }
  0x5e   :  { %602 = vmatpush3.bf16.msra.mxu0 %v599_v26  ;;  %632 = vmatprep.subr.bf16.mxu1 %v631_v35 }
  0x5f   :  { %604 = vmatprep.subr.bf16.mxu0 %v603_v32 }
  0x61   :  { %634 = vmatpush3.bf16.msra.mxu1 %v631_v35 }
  0x62   :  { %606 = vmatpush3.bf16.msra.mxu0 %v603_v32  ;;  %636 = vmatprep.subr.bf16.mxu1 %v635_v41 }
  0x63   :  { %608 = vmatprep.subr.bf16.mxu0 %v607_v38 }
  0x65   :  { %638 = vmatpush3.bf16.msra.mxu1 %v635_v41 }
  0x66   :  { %610 = vmatpush3.bf16.msra.mxu0 %v607_v38  ;;  %640 = vmatprep.subr.bf16.mxu1 %v639_v47 }
  0x67   :  { %612 = vmatprep.subr.bf16.mxu0 %v611_v44 }
  0x69   :  { %642 = vmatpush3.bf16.msra.mxu1 %v639_v47 }
  0x6a   :  { %614 = vmatpush3.bf16.msra.mxu0 %v611_v44  ;;  %644 = vmatprep.subr.bf16.mxu1 %v643_v53 }
  0x6b   :  { %648 = vmatprep.subr.bf16.mxu0 %v647_v50 }
  0x6d   :  { %511 = vmatmul.mubr.f32.vlgmr.msra.gmra.mrb[0].mxu0 %v81_v54  ;;  %646 = vmatpush3.bf16.msra.mxu1 %v643_v53 }
  0x6e   :  { %650 = vmatpush3.bf16.msra.mxu0 %v647_v50  ;;  %580 = vmatprep.mubr.f32.mxu0 %v975_v14  ;;  %v102_v14 = vrot.slane %v82_v13, %v101_v12 }
  0x6f   :  { %652 = vmatprep.subr.bf16.mxu0 %v651_v55 }
  0x70   :  { %546 = vmatmul.mubr.f32.vlgmr.msra.gmra.mrb[0].mxu1 %v81_v54 }
  0x72   :  { %654 = vmatpush3.bf16.msra.mxu0 %v651_v55 }
  0x73   :  { %656 = vmatprep.subr.bf16.mxu0 %v655_v58 }
  0x76   :  { %658 = vmatpush3.bf16.msra.mxu0 %v655_v58 }
  0x77   :  { %660 = vmatprep.subr.bf16.mxu0 %v659_v61 }
  0x7a   :  { %662 = vmatpush3.bf16.msra.mxu0 %v659_v61 }
  0x7b   :  { %664 = vmatprep.subr.bf16.mxu0 %v663_v0 }
  0x7e   :  { %666 = vmatpush3.bf16.msra.mxu0 %v663_v0 }
  0x7f   :  { %668 = vmatprep.subr.bf16.mxu0 %v667_v3 }
  0x82   :  { %670 = vmatpush3.bf16.msra.mxu0 %v667_v3 }
  0x83   :  { %672 = vmatprep.subr.bf16.mxu0 %v671_v6 }
  0x86   :  { %674 = vmatpush3.bf16.msra.mxu0 %v671_v6 }
  0x87   :  { %676 = vmatprep.subr.bf16.mxu0 %v675_v9 }
  0x8a   :  { %678 = vmatpush3.bf16.msra.mxu0 %v675_v9 }
  0x8d   :  { %581 = vmatmul.mubr.f32.vlgmr.msra.gmra.mrb[2].mxu0 %v81_v54 }
 0x140   :  { %v512_v16 = vpop.f32.mrb[0].mxu0 }
 0x141   :  { %v175_v17 = vadd.f32 %v512_v16, %v102_v14  ;;  %v169_v18 = vpop.f32.mrb[1].mxu0 }
 0x142   :  { %v170_v19 = vadd.f32 %v169_v18, %v102_v14 }
 0x143   :  { %369 = vst [vmem:[#allocation10 + $0x8] sm:$0xff] %v175_v17  ;;  %v547_v21 = vpop.f32.mrb[0].mxu1 }
 0x144   :  { %368 = vst [vmem:[#allocation10] sm:$0xff] %v170_v19 }
 0x145   :  { %787 = shalt.err (!%p784_p8)
}
 0x146   :  { %s788_s11 = scalar_lea.hbm %s1033_s5, 256 }
 0x147   :  { %p789_p9 = scmp.ne.s32.totalorder %s1033_s5, %s788_s11  ;;  %p792_p10 = scmp.lt.u32.totalorder %s788_s11, %s1033_s5 }
 0x149   :  { %p794_p11 = pnand %p792_p10, %p789_p9 }
 0x14b   :  { %797 = shalt.err (!%p794_p11)
}
 0x14c   :  { %385 = dma.vmem_to_hbm [thread:$0]  %s380_s29, 256, %s1033_s5, [#allocation4], %s854_s13, %s854_s13, %s855_s14   ;;  %v270_v22 = vadd.f32 %v547_v21, %v197_v20  ;;  %v264_v23 = vpop.f32.mrb[1].mxu1 }
 0x14d   :  { %v265_v24 = vadd.f32 %v264_v23, %v197_v20  ;;  %s798_s18 = scalar_lea.vmem %s392_s8, 256  ;;  %p803_p13 = scmp.lt.s32.totalorder %s392_s8, %s392_s8 }
 0x14e   :  { %371 = vst [vmem:[#allocation11 + $0x8] sm:$0xff] %v270_v22  ;;  %p799_p12 = scmp.ne.s32.totalorder %s392_s8, %s798_s18  ;;  %p804_p0 = scmp.lt.s32.totalorder %s798_s18, %s798_s18 }
 0x14f   :  { %370 = vst [vmem:[#allocation11] sm:$0xff] %v265_v24 }
 0x150   :  { %p805_p1 = por %p804_p0, %p803_p13 }
 0x152   :  { %p806_p2 = pnand %p805_p1, %p799_p12 }
 0x154   :  { %809 = shalt.err (!%p806_p2)
}
 0x155   :  { %s810_s21 = scalar_lea.hbm %s1034_s6, 256 }
 0x156   :  { %p811_p3 = scmp.ne.s32.totalorder %s1034_s6, %s810_s21  ;;  %p814_p4 = scmp.lt.u32.totalorder %s810_s21, %s1034_s6 }
 0x158   :  { %p816_p5 = pnand %p814_p4, %p811_p3 }
 0x15a   :  { %819 = shalt.err (!%p816_p5)
}
 0x15b   :  { %397 = dma.vmem_to_hbm [thread:$0]  %s392_s8, 256, %s1034_s6, [#allocation12], %s854_s13, %s854_s13, %s855_s14   ;;  %v291_v25 = vsub.s32 2, %v100_v11 }
 0x15c   :  { %s860_s25 = smov [#allocation13]  }
 0x15d   :  { %v292_v26 = vrot.slane %v82_v13, %v291_v25  ;;  %s403_s3 = sshll.u32 %s860_s25, 4  ;;  %s404_s3 = int_to_ptr.vmem [resolvable:$true] %s403_s3 }
 0x15e   :  { %s820_s26 = scalar_lea.vmem %s404_s3, 256  ;;  %p825_p7 = scmp.lt.s32.totalorder %s404_s3, %s404_s3 }
 0x15f   :  { %p821_p6 = scmp.ne.s32.totalorder %s404_s3, %s820_s26  ;;  %p826_p8 = scmp.lt.s32.totalorder %s820_s26, %s820_s26 }
 0x160   :  { %v582_v27 = vpop.f32.mrb[2].mxu0 }
 0x161   :  { %v365_v28 = vadd.f32 %v582_v27, %v292_v26  ;;  %v359_v29 = vpop.f32.mrb[3].mxu0  ;;  %p827_p9 = por %p826_p8, %p825_p7 }
 0x162   :  { %v360_v30 = vadd.f32 %v359_v29, %v292_v26 }
 0x163   :  { %373 = vst [vmem:[#allocation13 + $0x8] sm:$0xff] %v365_v28  ;;  %p828_p10 = pnand %p827_p9, %p821_p6 }
 0x164   :  { %372 = vst [vmem:[#allocation13] sm:$0xff] %v360_v30 }
 0x165   :  { %831 = shalt.err (!%p828_p10)
}
 0x166   :  { %s832_s29 = scalar_lea.hbm %s1035_s7, 256 }
 0x167   :  { %p833_p11 = scmp.ne.s32.totalorder %s1035_s7, %s832_s29  ;;  %p836_p12 = scmp.lt.u32.totalorder %s832_s29, %s1035_s7 }
 0x169   :  { %p838_p13 = pnand %p836_p12, %p833_p11 }
 0x16b   :  { %841 = shalt.err (!%p838_p13)
}
 0x16c   :  { %409 = dma.vmem_to_hbm [thread:$0]  %s404_s3, 256, %s1035_s7, [#allocation12], %s854_s13, %s854_s13, %s855_s14  }
 0x16d   :  { %848 = dma.done.wait [#allocation4], 256  }
 0x16e   :  { %849 = vsyncadd [#allocation4], 4294967040 }
 0x16f   :  { %850 = dma.done.wait [#allocation12], 512  }
 0x170   :  { %851 = vsyncadd [#allocation12], 4294966784 }
 0x171   :  { %419 = vsyncpa [#allocation3], 1 }
 0x172   :  { %420 = vsyncpa [#allocation6], 1 }
 0x173   :  { %421 = vsyncpa [#allocation9], 1 }
 0x174   :  { %422 = vsyncpa [#allocation4], 1 }
 0x175   :  { %423 = vsyncpa [#allocation12], 1 }

</bundles_post_ra>
